<compile_context>
chip_gen: v5e
topology: v5e:2x2
jax: 0.10.0
libtpu: 0.0.40
codegen_flags: <defaults>
</compile_context>

<pallas_src>
import functools

import jax
import jax.numpy as jnp
from jax.experimental import pallas as pl
from jax.experimental.pallas import tpu as pltpu


def rnn_classifier_kernel(xw_ref,    # [T, Mb, H]  pre-projected inputs (x@Wx + bx + bh)
                          wh_ref,    # [H, H]      h2h weight (transposed)
                          wfc_ref,   # [T*H, Cp]   fc weight (transposed, class-padded w/ 0)
                          bfc_ref,   # [1, Cp]     fc bias (padded lanes hold -BIG)
                          out_ref):  # [Mb, Cp]    log-softmax output (lane-dense)
    T, Mb, H = xw_ref.shape
    Cp = wfc_ref.shape[1]

    wh = wh_ref[...]
    xw = xw_ref[...]   # [T, Mb, H]; tiny, lives in vregs

    # Recurrence: only h @ Wh + tanh on the serial critical path; the FC
    # contribution of each step is accumulated immediately so it overlaps the
    # MXU with the next recurrence step instead of waiting on a VMEM scratch.
    h = jnp.zeros((Mb, H), dtype=jnp.float32)
    logits = jnp.zeros((Mb, Cp), dtype=jnp.float32)
    for t in range(T):  # T is a small static constant -> fully unrolled
        h = jnp.tanh(xw[t] + jnp.dot(h, wh, preferred_element_type=jnp.float32))
        # wfc row-block [t*H:(t+1)*H) is sublane-aligned (H is a multiple of 8).
        logits = logits + jnp.dot(
            h, wfc_ref[t * H:(t + 1) * H, :], preferred_element_type=jnp.float32)

    # Bias add: padded class lanes carry -BIG here (wfc padding is zero), so no
    # explicit lane mask is needed before the softmax.
    logits = logits + bfc_ref[...]

    # Stable log_softmax along classes (f32 VPU/EUP math on all generations).
    m = jnp.max(logits, axis=1, keepdims=True)
    shifted = logits - m
    lse = jnp.log(jnp.sum(jnp.exp(shifted), axis=1, keepdims=True))
    out_ref[...] = (shifted - lse).astype(out_ref.dtype)


def rnn_classifier_forward(tokens, emb_table, wx, bx, wh, bh, wfc, bfc):
    """tokens: int32 [B, T].  Returns log-probs [B, C]."""
    B, T = tokens.shape
    H = wx.shape[1]
    C = wfc.shape[1]

    SUBLANE, LANE = 8, 128
    MB_MAX = 512                                      # batch tile (sublane-aligned)

    Bp = max(SUBLANE, pl.cdiv(B, SUBLANE) * SUBLANE)  # pad batch to full sublanes
    if Bp >= MB_MAX:
        Mb = MB_MAX
        Bp = pl.cdiv(Bp, Mb) * Mb                     # make batch a multiple of the tile
    else:
        Mb = Bp
    Cp = max(LANE, pl.cdiv(C, LANE) * LANE)           # pad classes to full lanes

    # Precompute the projected embedding table (model constant; constant-folds /
    # caches under jit): emb_proj[v] = emb[v] @ Wx + bx + bh.
    emb_proj = (jnp.dot(emb_table, wx, preferred_element_type=jnp.float32)
                + (bx + bh)).astype(jnp.float32)

    # Pad batch with token id 0 (any valid id); padded rows are sliced away.
    tokens_p = jnp.pad(tokens, ((0, Bp - B), (0, 0)))

    # Gather pre-projected inputs directly in time-major order: [T, Bp, H].
    xw_tbh = jnp.take(emb_proj, tokens_p.T, axis=0)

    # fc weight: zero-pad extra class columns; fc bias: -BIG on padded lanes so
    # padded logits are automatically masked (f32-safe sentinel, no overflow).
    NEG = jnp.finfo(jnp.float32).min / 2
    wfc_p = jnp.pad(wfc, ((0, 0), (0, Cp - C)))                     # [T*H, Cp]
    bfc_p = jnp.pad(bfc, (0, Cp - C),
                    constant_values=NEG).reshape(1, Cp)             # [1, Cp]

    grid = (Bp // Mb,)
    out_p = pl.pallas_call(
        rnn_classifier_kernel,
        out_shape=jax.ShapeDtypeStruct((Bp, Cp), jnp.float32),
        grid=grid,
        in_specs=[
            pl.BlockSpec((T, Mb, H), lambda i: (0, i, 0)),   # stream batch tiles
            pl.BlockSpec((H, H), lambda i: (0, 0)),          # weights: constant block
            pl.BlockSpec((T * H, Cp), lambda i: (0, 0)),     #  -> DMA'd once, VMEM-resident
            pl.BlockSpec((1, Cp), lambda i: (0, 0)),
        ],
        out_specs=pl.BlockSpec((Mb, Cp), lambda i: (i, 0)),
        compiler_params=pltpu.CompilerParams(
            dimension_semantics=("parallel",)),              # shard batch grid on v7x's 2 TCs
    )(xw_tbh, wh, wfc_p, bfc_p)

    return out_p[:B, :C]


def reference_forward(tokens, emb_table, wx, bx, wh, bh, wfc, bfc):
    """Pure-JAX reference matching the PyTorch module semantics."""
    B, T = tokens.shape
    H = wx.shape[1]
    x = jnp.take(emb_table, tokens, axis=0)          # [B, T, E]
    h = jnp.zeros((B, H), jnp.float32)
    outs = []
    for t in range(T):
        h = jnp.tanh(x[:, t, :] @ wx + bx + h @ wh + bh)
        outs.append(h)
    out = jnp.stack(outs, axis=1)                    # [B, T, H]
    flat = out.reshape(B, T * H)
    logits = flat @ wfc + bfc
    return jax.nn.log_softmax(logits, axis=1)


if __name__ == "__main__":
    # Small, module-consistent shapes.
    word_num = 100
    embedding_size = 32   # E
    hidden_size = 32      # H
    max_length = 8        # T
    num_classes = 10      # C
    batch = 2             # B

    key = jax.random.PRNGKey(0)
    k_emb, k_wx, k_bx, k_wh, k_bh, k_wfc, k_bfc, k_tok = jax.random.split(key, 8)

    emb_table = jax.random.normal(k_emb, (word_num, embedding_size), jnp.float32)
    # nn.Linear(input, hidden): weight [H, E]; we store the transpose [E, H].
    wx = 0.1 * jax.random.normal(k_wx, (embedding_size, hidden_size), jnp.float32)
    bx = 0.1 * jax.random.normal(k_bx, (hidden_size,), jnp.float32)
    wh = 0.1 * jax.random.normal(k_wh, (hidden_size, hidden_size), jnp.float32)
    bh = 0.1 * jax.random.normal(k_bh, (hidden_size,), jnp.float32)
    # nn.Linear(T*H, C): weight [C, T*H]; we store the transpose [T*H, C].
    wfc = 0.05 * jax.random.normal(k_wfc, (max_length * hidden_size, num_classes),
                                   jnp.float32)
    bfc = 0.05 * jax.random.normal(k_bfc, (num_classes,), jnp.float32)

    tokens = jax.random.randint(k_tok, (batch, max_length), 0, word_num,
                                dtype=jnp.int32)

    out = rnn_classifier_forward(tokens, emb_table, wx, bx, wh, bh, wfc, bfc)
    out = jax.block_until_ready(out)

    ref = reference_forward(tokens, emb_table, wx, bx, wh, bh, wfc, bfc)
    assert out.shape == (batch, num_classes)
    assert jnp.allclose(out, ref, atol=1e-4, rtol=1e-4), (out, ref)

    print("KERNEL_OK")
</pallas_src>

<mosaic_0001>
module attributes {stable_mosaic.version = 11 : i64} {
  func.func @rnn_classifier_kernel(%arg0: i32, %arg1: memref<8x8x32xf32, #tpu.memory_space<vmem>>, %arg2: memref<32x32xf32, #tpu.memory_space<vmem>>, %arg3: memref<256x128xf32, #tpu.memory_space<vmem>>, %arg4: memref<1x128xf32, #tpu.memory_space<vmem>>, %arg5: memref<8x128xf32, #tpu.memory_space<vmem>>) attributes {dimension_semantics = [#tpu.dimension_semantics<parallel>], iteration_bounds = array<i64: 1>, scalar_prefetch = 0 : i64, scratch_operands = 0 : i64, tpu.core_type = #tpu.core_type<tc>, window_params = [{transform_indices = @transform_0, window_bounds = array<i64: 8, 8, 32>}, {pipeline_mode = #tpu.pipeline_mode<synchronous>, transform_indices = @transform_1, window_bounds = array<i64: 32, 32>}, {pipeline_mode = #tpu.pipeline_mode<synchronous>, transform_indices = @transform_2, window_bounds = array<i64: 256, 128>}, {pipeline_mode = #tpu.pipeline_mode<synchronous>, transform_indices = @transform_3, window_bounds = array<i64: 1, 128>}, {transform_indices = @transform_4, window_bounds = array<i64: 8, 128>}]} {
    %c0 = arith.constant 0 : index
    %c0_0 = arith.constant 0 : index
    %0 = vector.load %arg2[%c0, %c0_0] : memref<32x32xf32, #tpu.memory_space<vmem>>, vector<32x32xf32>
    %c0_1 = arith.constant 0 : index
    %c0_2 = arith.constant 0 : index
    %c0_3 = arith.constant 0 : index
    %1 = vector.load %arg1[%c0_1, %c0_2, %c0_3] : memref<8x8x32xf32, #tpu.memory_space<vmem>>, vector<8x8x32xf32>
    %cst = arith.constant 0.000000e+00 : f32
    %2 = vector.broadcast %cst : f32 to vector<8x32xf32>
    %cst_4 = arith.constant 0.000000e+00 : f32
    %3 = vector.broadcast %cst_4 : f32 to vector<8x128xf32>
    %4 = vector.extract_strided_slice %1 {offsets = [0, 0, 0], sizes = [1, 8, 32], strides = [1, 1, 1]} : vector<8x8x32xf32> to vector<1x8x32xf32>
    %5 = vector.shape_cast %4 : vector<1x8x32xf32> to vector<8x32xf32>
    %cst_5 = arith.constant dense<0.000000e+00> : vector<8x32xf32>
    %6 = tpu.matmul %2, %0, %cst_5 {dimension_numbers = #tpu.dot_dimension_numbers<[1], [0], [0], [1], [0, 0, 1, 1], [], []>} : vector<8x32xf32>, vector<32x32xf32>, vector<8x32xf32> -> vector<8x32xf32>
    %7 = arith.addf %5, %6 : vector<8x32xf32>
    %8 = math.tanh %7 : vector<8x32xf32>
    %c0_6 = arith.constant 0 : index
    %c0_7 = arith.constant 0 : index
    %9 = vector.load %arg3[%c0_6, %c0_7] : memref<256x128xf32, #tpu.memory_space<vmem>>, vector<32x128xf32>
    %cst_8 = arith.constant dense<0.000000e+00> : vector<8x128xf32>
    %10 = tpu.matmul %8, %9, %cst_8 {dimension_numbers = #tpu.dot_dimension_numbers<[1], [0], [0], [1], [0, 0, 1, 1], [], []>} : vector<8x32xf32>, vector<32x128xf32>, vector<8x128xf32> -> vector<8x128xf32>
    %11 = arith.addf %3, %10 : vector<8x128xf32>
    %12 = vector.extract_strided_slice %1 {offsets = [1, 0, 0], sizes = [1, 8, 32], strides = [1, 1, 1]} : vector<8x8x32xf32> to vector<1x8x32xf32>
    %13 = vector.shape_cast %12 : vector<1x8x32xf32> to vector<8x32xf32>
    %cst_9 = arith.constant dense<0.000000e+00> : vector<8x32xf32>
    %14 = tpu.matmul %8, %0, %cst_9 {dimension_numbers = #tpu.dot_dimension_numbers<[1], [0], [0], [1], [0, 0, 1, 1], [], []>} : vector<8x32xf32>, vector<32x32xf32>, vector<8x32xf32> -> vector<8x32xf32>
    %15 = arith.addf %13, %14 : vector<8x32xf32>
    %16 = math.tanh %15 : vector<8x32xf32>
    %c32 = arith.constant 32 : index
    %c0_10 = arith.constant 0 : index
    %17 = vector.load %arg3[%c32, %c0_10] : memref<256x128xf32, #tpu.memory_space<vmem>>, vector<32x128xf32>
    %cst_11 = arith.constant dense<0.000000e+00> : vector<8x128xf32>
    %18 = tpu.matmul %16, %17, %cst_11 {dimension_numbers = #tpu.dot_dimension_numbers<[1], [0], [0], [1], [0, 0, 1, 1], [], []>} : vector<8x32xf32>, vector<32x128xf32>, vector<8x128xf32> -> vector<8x128xf32>
    %19 = arith.addf %11, %18 : vector<8x128xf32>
    %20 = vector.extract_strided_slice %1 {offsets = [2, 0, 0], sizes = [1, 8, 32], strides = [1, 1, 1]} : vector<8x8x32xf32> to vector<1x8x32xf32>
    %21 = vector.shape_cast %20 : vector<1x8x32xf32> to vector<8x32xf32>
    %cst_12 = arith.constant dense<0.000000e+00> : vector<8x32xf32>
    %22 = tpu.matmul %16, %0, %cst_12 {dimension_numbers = #tpu.dot_dimension_numbers<[1], [0], [0], [1], [0, 0, 1, 1], [], []>} : vector<8x32xf32>, vector<32x32xf32>, vector<8x32xf32> -> vector<8x32xf32>
    %23 = arith.addf %21, %22 : vector<8x32xf32>
    %24 = math.tanh %23 : vector<8x32xf32>
    %c64 = arith.constant 64 : index
    %c0_13 = arith.constant 0 : index
    %25 = vector.load %arg3[%c64, %c0_13] : memref<256x128xf32, #tpu.memory_space<vmem>>, vector<32x128xf32>
    %cst_14 = arith.constant dense<0.000000e+00> : vector<8x128xf32>
    %26 = tpu.matmul %24, %25, %cst_14 {dimension_numbers = #tpu.dot_dimension_numbers<[1], [0], [0], [1], [0, 0, 1, 1], [], []>} : vector<8x32xf32>, vector<32x128xf32>, vector<8x128xf32> -> vector<8x128xf32>
    %27 = arith.addf %19, %26 : vector<8x128xf32>
    %28 = vector.extract_strided_slice %1 {offsets = [3, 0, 0], sizes = [1, 8, 32], strides = [1, 1, 1]} : vector<8x8x32xf32> to vector<1x8x32xf32>
    %29 = vector.shape_cast %28 : vector<1x8x32xf32> to vector<8x32xf32>
    %cst_15 = arith.constant dense<0.000000e+00> : vector<8x32xf32>
    %30 = tpu.matmul %24, %0, %cst_15 {dimension_numbers = #tpu.dot_dimension_numbers<[1], [0], [0], [1], [0, 0, 1, 1], [], []>} : vector<8x32xf32>, vector<32x32xf32>, vector<8x32xf32> -> vector<8x32xf32>
    %31 = arith.addf %29, %30 : vector<8x32xf32>
    %32 = math.tanh %31 : vector<8x32xf32>
    %c96 = arith.constant 96 : index
    %c0_16 = arith.constant 0 : index
    %33 = vector.load %arg3[%c96, %c0_16] : memref<256x128xf32, #tpu.memory_space<vmem>>, vector<32x128xf32>
    %cst_17 = arith.constant dense<0.000000e+00> : vector<8x128xf32>
    %34 = tpu.matmul %32, %33, %cst_17 {dimension_numbers = #tpu.dot_dimension_numbers<[1], [0], [0], [1], [0, 0, 1, 1], [], []>} : vector<8x32xf32>, vector<32x128xf32>, vector<8x128xf32> -> vector<8x128xf32>
    %35 = arith.addf %27, %34 : vector<8x128xf32>
    %36 = vector.extract_strided_slice %1 {offsets = [4, 0, 0], sizes = [1, 8, 32], strides = [1, 1, 1]} : vector<8x8x32xf32> to vector<1x8x32xf32>
    %37 = vector.shape_cast %36 : vector<1x8x32xf32> to vector<8x32xf32>
    %cst_18 = arith.constant dense<0.000000e+00> : vector<8x32xf32>
    %38 = tpu.matmul %32, %0, %cst_18 {dimension_numbers = #tpu.dot_dimension_numbers<[1], [0], [0], [1], [0, 0, 1, 1], [], []>} : vector<8x32xf32>, vector<32x32xf32>, vector<8x32xf32> -> vector<8x32xf32>
    %39 = arith.addf %37, %38 : vector<8x32xf32>
    %40 = math.tanh %39 : vector<8x32xf32>
    %c128 = arith.constant 128 : index
    %c0_19 = arith.constant 0 : index
    %41 = vector.load %arg3[%c128, %c0_19] : memref<256x128xf32, #tpu.memory_space<vmem>>, vector<32x128xf32>
    %cst_20 = arith.constant dense<0.000000e+00> : vector<8x128xf32>
    %42 = tpu.matmul %40, %41, %cst_20 {dimension_numbers = #tpu.dot_dimension_numbers<[1], [0], [0], [1], [0, 0, 1, 1], [], []>} : vector<8x32xf32>, vector<32x128xf32>, vector<8x128xf32> -> vector<8x128xf32>
    %43 = arith.addf %35, %42 : vector<8x128xf32>
    %44 = vector.extract_strided_slice %1 {offsets = [5, 0, 0], sizes = [1, 8, 32], strides = [1, 1, 1]} : vector<8x8x32xf32> to vector<1x8x32xf32>
    %45 = vector.shape_cast %44 : vector<1x8x32xf32> to vector<8x32xf32>
    %cst_21 = arith.constant dense<0.000000e+00> : vector<8x32xf32>
    %46 = tpu.matmul %40, %0, %cst_21 {dimension_numbers = #tpu.dot_dimension_numbers<[1], [0], [0], [1], [0, 0, 1, 1], [], []>} : vector<8x32xf32>, vector<32x32xf32>, vector<8x32xf32> -> vector<8x32xf32>
    %47 = arith.addf %45, %46 : vector<8x32xf32>
    %48 = math.tanh %47 : vector<8x32xf32>
    %c160 = arith.constant 160 : index
    %c0_22 = arith.constant 0 : index
    %49 = vector.load %arg3[%c160, %c0_22] : memref<256x128xf32, #tpu.memory_space<vmem>>, vector<32x128xf32>
    %cst_23 = arith.constant dense<0.000000e+00> : vector<8x128xf32>
    %50 = tpu.matmul %48, %49, %cst_23 {dimension_numbers = #tpu.dot_dimension_numbers<[1], [0], [0], [1], [0, 0, 1, 1], [], []>} : vector<8x32xf32>, vector<32x128xf32>, vector<8x128xf32> -> vector<8x128xf32>
    %51 = arith.addf %43, %50 : vector<8x128xf32>
    %52 = vector.extract_strided_slice %1 {offsets = [6, 0, 0], sizes = [1, 8, 32], strides = [1, 1, 1]} : vector<8x8x32xf32> to vector<1x8x32xf32>
    %53 = vector.shape_cast %52 : vector<1x8x32xf32> to vector<8x32xf32>
    %cst_24 = arith.constant dense<0.000000e+00> : vector<8x32xf32>
    %54 = tpu.matmul %48, %0, %cst_24 {dimension_numbers = #tpu.dot_dimension_numbers<[1], [0], [0], [1], [0, 0, 1, 1], [], []>} : vector<8x32xf32>, vector<32x32xf32>, vector<8x32xf32> -> vector<8x32xf32>
    %55 = arith.addf %53, %54 : vector<8x32xf32>
    %56 = math.tanh %55 : vector<8x32xf32>
    %c192 = arith.constant 192 : index
    %c0_25 = arith.constant 0 : index
    %57 = vector.load %arg3[%c192, %c0_25] : memref<256x128xf32, #tpu.memory_space<vmem>>, vector<32x128xf32>
    %cst_26 = arith.constant dense<0.000000e+00> : vector<8x128xf32>
    %58 = tpu.matmul %56, %57, %cst_26 {dimension_numbers = #tpu.dot_dimension_numbers<[1], [0], [0], [1], [0, 0, 1, 1], [], []>} : vector<8x32xf32>, vector<32x128xf32>, vector<8x128xf32> -> vector<8x128xf32>
    %59 = arith.addf %51, %58 : vector<8x128xf32>
    %60 = vector.extract_strided_slice %1 {offsets = [7, 0, 0], sizes = [1, 8, 32], strides = [1, 1, 1]} : vector<8x8x32xf32> to vector<1x8x32xf32>
    %61 = vector.shape_cast %60 : vector<1x8x32xf32> to vector<8x32xf32>
    %cst_27 = arith.constant dense<0.000000e+00> : vector<8x32xf32>
    %62 = tpu.matmul %56, %0, %cst_27 {dimension_numbers = #tpu.dot_dimension_numbers<[1], [0], [0], [1], [0, 0, 1, 1], [], []>} : vector<8x32xf32>, vector<32x32xf32>, vector<8x32xf32> -> vector<8x32xf32>
    %63 = arith.addf %61, %62 : vector<8x32xf32>
    %64 = math.tanh %63 : vector<8x32xf32>
    %c224 = arith.constant 224 : index
    %c0_28 = arith.constant 0 : index
    %65 = vector.load %arg3[%c224, %c0_28] : memref<256x128xf32, #tpu.memory_space<vmem>>, vector<32x128xf32>
    %cst_29 = arith.constant dense<0.000000e+00> : vector<8x128xf32>
    %66 = tpu.matmul %64, %65, %cst_29 {dimension_numbers = #tpu.dot_dimension_numbers<[1], [0], [0], [1], [0, 0, 1, 1], [], []>} : vector<8x32xf32>, vector<32x128xf32>, vector<8x128xf32> -> vector<8x128xf32>
    %67 = arith.addf %59, %66 : vector<8x128xf32>
    %c0_30 = arith.constant 0 : index
    %c0_31 = arith.constant 0 : index
    %68 = vector.load %arg4[%c0_30, %c0_31] : memref<1x128xf32, #tpu.memory_space<vmem>>, vector<1x128xf32>
    %69 = vector.broadcast %68 : vector<1x128xf32> to vector<8x128xf32>
    %70 = arith.addf %67, %69 : vector<8x128xf32>
    %cst_32 = arith.constant dense<0xFF800000> : vector<8xf32>
    %71 = vector.multi_reduction <maximumf>, %70, %cst_32 [1] : vector<8x128xf32> to vector<8xf32>
    %72 = vector.shape_cast %71 : vector<8xf32> to vector<8x1xf32>
    %73 = vector.broadcast %72 : vector<8x1xf32> to vector<8x128xf32>
    %74 = arith.subf %70, %73 : vector<8x128xf32>
    %75 = math.exp %74 : vector<8x128xf32>
    %cst_33 = arith.constant dense<0.000000e+00> : vector<8xf32>
    %76 = vector.multi_reduction <add>, %75, %cst_33 [1] : vector<8x128xf32> to vector<8xf32>
    %77 = vector.shape_cast %76 : vector<8xf32> to vector<8x1xf32>
    %78 = math.log %77 : vector<8x1xf32>
    %79 = vector.broadcast %78 : vector<8x1xf32> to vector<8x128xf32>
    %80 = arith.subf %74, %79 : vector<8x128xf32>
    %c0_34 = arith.constant 0 : index
    %c0_35 = arith.constant 0 : index
    %81 = vector.load %arg5[%c0_34, %c0_35] : memref<8x128xf32, #tpu.memory_space<vmem>>, vector<8x128xf32>
    tpu.vector_store %arg5[%c0_34, %c0_35], %80 {strides = array<i32>} : memref<8x128xf32, #tpu.memory_space<vmem>>, vector<8x128xf32>,
    return
  }
  func.func @transform_0(%arg0: i32) -> (i32, i32, i32) {
    %c0_i32 = arith.constant 0 : i32
    %c0_i32_0 = arith.constant 0 : i32
    %c0_i32_1 = arith.constant 0 : i32
    return %c0_i32, %arg0, %c0_i32_0 : i32, i32, i32
  }
  func.func @transform_1(%arg0: i32) -> (i32, i32) {
    %c0_i32 = arith.constant 0 : i32
    %c0_i32_0 = arith.constant 0 : i32
    %c0_i32_1 = arith.constant 0 : i32
    return %c0_i32, %c0_i32_0 : i32, i32
  }
  func.func @transform_2(%arg0: i32) -> (i32, i32) {
    %c0_i32 = arith.constant 0 : i32
    %c0_i32_0 = arith.constant 0 : i32
    %c0_i32_1 = arith.constant 0 : i32
    return %c0_i32, %c0_i32_0 : i32, i32
  }
  func.func @transform_3(%arg0: i32) -> (i32, i32) {
    %c0_i32 = arith.constant 0 : i32
    %c0_i32_0 = arith.constant 0 : i32
    %c0_i32_1 = arith.constant 0 : i32
    return %c0_i32, %c0_i32_0 : i32, i32
  }
  func.func @transform_4(%arg0: i32) -> (i32, i32) {
    %c0_i32 = arith.constant 0 : i32
    %c0_i32_0 = arith.constant 0 : i32
    return %arg0, %c0_i32 : i32, i32
  }
}

</mosaic_0001>

<bundles_post_ra>
// kernel: tpu_custom_call.1
= control target key start
LH: loop header
LB: loop body
LE: loop exit
PB: predicated region body
PF: predicated region fallthrough
CT: control target
= control target key end

     0   :  { %9 = vsyncpa [#allocation3], 0  ;;  %s763_s0 = inlined_call_operand.hbm [shape: f32[8,8,32], index: 0, kind: input, shape index: {}]   ;;  %s764_s1 = inlined_call_operand.hbm [shape: f32[32,32], index: 1, kind: input, shape index: {}]   ;;  %s765_s2 = inlined_call_operand.hbm [shape: f32[256,128], index: 2, kind: input, shape index: {}]   ;;  %s766_s3 = inlined_call_operand.vmem [shape: f32[1,128], index: 3, kind: input, shape index: {}]   ;;  %s767_s4 = inlined_call_operand.hbm [shape: f32[8,128], index: 4, kind: output, shape index: {}]  }
   0x1   :  { %10 = vsyncpa [#allocation6], 0 }
   0x2   :  { %11 = vsyncpa [#allocation4], 0  ;;  %s29_s17 = sshll.u32 %s764_s1, 4  ;;  %s658_s18 = smov [#allocation5]   ;;  %s30_s17 = int_to_ptr.hbm [resolvable:$true] %s29_s17 }
   0x3   :  { %s31_s19 = sshll.u32 %s658_s18, 4  ;;  %s16_s22 = sshll.u32 %s763_s0, 4  ;;  %s32_s19 = int_to_ptr.vmem [resolvable:$true] %s31_s19  ;;  %s17_s22 = int_to_ptr.hbm [resolvable:$true] %s16_s22 }
   0x4   :  { %s659_s23 = smov 128   ;;  %s660_s24 = smov 8  }
   0x5   :  { %37 = dma.hbm_to_vmem [thread:$0]  %s30_s17, 512, %s32_s19, [#allocation6], %s659_s23, %s659_s23, %s660_s24  }
   0x6   :  { %s661_s25 = smov [#allocation2]   ;;  %s42_s29 = sshll.u32 %s765_s2, 4  ;;  %s43_s29 = int_to_ptr.hbm [resolvable:$true] %s42_s29 }
   0x7   :  { %s18_s26 = sshll.u32 %s661_s25, 4  ;;  %s662_s1 = smov [#allocation7]   ;;  %s19_s26 = int_to_ptr.vmem [resolvable:$true] %s18_s26 }
   0x8   :  { %24 = dma.hbm_to_vmem [thread:$0]  %s17_s22, 1024, %s19_s26, [#allocation3], %s659_s23, %s659_s23, %s660_s24  }
   0x9   :  { %s44_s30 = sshll.u32 %s662_s1, 4  ;;  %s45_s30 = int_to_ptr.vmem [resolvable:$true] %s44_s30 }
   0xa   :  { %50 = dma.hbm_to_vmem [thread:$0]  %s43_s29, 4096, %s45_s30, [#allocation6], %s659_s23, %s659_s23, %s660_s24  }
   0xb   :  { %652 = dma.done.wait [#allocation3], 1024  }
   0xc   :  { %653 = vsyncadd [#allocation3], 4294966272 }
   0xd   :  { %654 = dma.done.wait [#allocation6], 4608  }
   0xe   :  { %655 = vsyncadd [#allocation6], 4294962688  ;;  %v699_v0 = vld [vmem:[#allocation5 + $0x18] sm:$0xff]  ;;  %v701_v1 = vld [vmem:[#allocation5 + $0x10] sm:$0xff]  ;;  %v663_v4 = vmov 0.0   ;;  %vm77_vm0 = vcmask 261120  }
   0xf   :  { %93 = vmatpush.msra.mxu0 %v699_v0  ;;  %122 = vmatpush.msra.mxu1 %v699_v0  ;;  %v705_v2 = vld [vmem:[#allocation5 + $0x8] sm:$0xff]  ;;  %v709_v3 = vld [vmem:[#allocation5] sm:$0xff]  ;;  %v106_v5 = vld [vmem:[#allocation7 + $0x18] sm:$0xff]  ;;  %s664_s5 = smov [#allocation8]   ;;  %s502_s9 = sshll.u32 %s767_s4, 4  ;;  %s503_s9 = int_to_ptr.hbm [resolvable:$true] %s502_s9 }
  0x10   :  { %171 = vmatpush.msra.mxu3 %v106_v5  ;;  %v105_v6 = vld [vmem:[#allocation7 + $0x10] sm:$0xff]  ;;  %v104_v7 = vld [vmem:[#allocation7 + $0x8] sm:$0xff]  ;;  %v103_v8 = vld [vmem:[#allocation7] sm:$0xff]  ;;  %s500_s6 = sshll.u32 %s664_s5, 4  ;;  %s501_s6 = int_to_ptr.vmem [resolvable:$true] %s500_s6 }
  0x11   :  { %94 = vmatpush.msra.mxu0 %v701_v1  ;;  %123 = vmatpush.msra.mxu1 %v701_v1  ;;  %v69_v9 = vld [vmem:[#allocation2] sm:$0xff]  ;;  %v135_v13 = vld [vmem:[#allocation7 + $0x38] sm:$0xff]  ;;  %v134_v14 = vld [vmem:[#allocation7 + $0x30] sm:$0xff] }
  0x12   :  { %172 = vmatpush.msra.mxu3 %v105_v6  ;;  %151 = vmatpush.msra.mxu2 %v135_v13  ;;  %v133_v15 = vld [vmem:[#allocation7 + $0x28] sm:$0xff]  ;;  %v132_v16 = vld [vmem:[#allocation7 + $0x20] sm:$0xff]  ;;  %v204_v21 = vld [vmem:[#allocation7 + $0x58] sm:$0xff] }
  0x13   :  { %95 = vmatpush.msra.mxu0 %v705_v2  ;;  %124 = vmatpush.msra.mxu1 %v705_v2  ;;  %v70_v17 = vld [vmem:[#allocation2 + $0x8] sm:$0xff]  ;;  %v203_v22 = vld [vmem:[#allocation7 + $0x50] sm:$0xff]  ;;  %v201_v24 = vld [vmem:[#allocation7 + $0x40] sm:$0xff] }
  0x14   :  { %173 = vmatpush.msra.mxu3 %v104_v7  ;;  %152 = vmatpush.msra.mxu2 %v134_v14  ;;  %v202_v23 = vld [vmem:[#allocation7 + $0x48] sm:$0xff]  ;;  %v71_v25 = vld [vmem:[#allocation2 + $0x10] sm:$0xff]  ;;  %v254_v29 = vld [vmem:[#allocation7 + $0x78] sm:$0xff] }
  0x15   :  { %96 = vmatpush.msra.mxu0 %v709_v3  ;;  %125 = vmatpush.msra.mxu1 %v709_v3  ;;  %v253_v30 = vld [vmem:[#allocation7 + $0x70] sm:$0xff]  ;;  %v252_v31 = vld [vmem:[#allocation7 + $0x68] sm:$0xff]  ;;  %v251_v32 = vld [vmem:[#allocation7 + $0x60] sm:$0xff] }
  0x16   :  { %97 = vmatmul.f32.vlgmr.msra.gmra.mxu0 %v663_v4  ;;  %174 = vmatpush.msra.mxu3 %v103_v8  ;;  %v72_v34 = vld [vmem:[#allocation2 + $0x18] sm:$0xff]  ;;  %v303_v39 = vld [vmem:[#allocation7 + $0x90] sm:$0xff]  ;;  %v302_v40 = vld [vmem:[#allocation7 + $0x88] sm:$0xff] }
  0x17   :  { %191 = vmatpush.msrb.mxu0 %v699_v0  ;;  %153 = vmatpush.msra.mxu2 %v133_v15  ;;  %v304_v38 = vld [vmem:[#allocation7 + $0x98] sm:$0xff]  ;;  %v301_v41 = vld [vmem:[#allocation7 + $0x80] sm:$0xff]  ;;  %v353_v47 = vld [vmem:[#allocation7 + $0xb0] sm:$0xff] }
  0x18   :  { %220 = vmatpush.msrb.mxu1 %v204_v21  ;;  %270 = vmatpush.msrb.mxu3 %v254_v29  ;;  %v73_v42 = vld [vmem:[#allocation2 + $0x20] sm:$0xff]  ;;  %v354_v46 = vld [vmem:[#allocation7 + $0xb8] sm:$0xff]  ;;  %v352_v48 = vld [vmem:[#allocation7 + $0xa8] sm:$0xff] }
  0x19   :  { %192 = vmatpush.msrb.mxu0 %v701_v1  ;;  %154 = vmatpush.msra.mxu2 %v132_v16  ;;  %v351_v49 = vld [vmem:[#allocation7 + $0xa0] sm:$0xff]  ;;  %v74_v50 = vld [vmem:[#allocation2 + $0x28] sm:$0xff]  ;;  %v404_v54 = vld [vmem:[#allocation7 + $0xd8] sm:$0xff] }
  0x1a   :  { %221 = vmatpush.msrb.mxu1 %v203_v22  ;;  %271 = vmatpush.msrb.mxu3 %v253_v30  ;;  %v403_v55 = vld [vmem:[#allocation7 + $0xd0] sm:$0xff]  ;;  %v402_v56 = vld [vmem:[#allocation7 + $0xc8] sm:$0xff]  ;;  %v401_v57 = vld [vmem:[#allocation7 + $0xc0] sm:$0xff] }
  0x1b   :  { %193 = vmatpush.msrb.mxu0 %v705_v2  ;;  %241 = vmatpush.msrb.mxu2 %v699_v0  ;;  %v75_v58 = vld [vmem:[#allocation2 + $0x30] sm:$0xff]  ;;  %v454_v62 = vld [vmem:[#allocation7 + $0xf8] sm:$0xff] }
  0x1c   :  { %222 = vmatpush.msrb.mxu1 %v202_v23  ;;  %272 = vmatpush.msrb.mxu3 %v252_v31  ;;  %v453_v63 = vld [vmem:[#allocation7 + $0xf0] sm:$0xff] }
  0x1d   :  { %194 = vmatpush.msrb.mxu0 %v709_v3  ;;  %242 = vmatpush.msrb.mxu2 %v701_v1 }
  0x1e   :  { %223 = vmatpush.msrb.mxu1 %v201_v24  ;;  %273 = vmatpush.msrb.mxu3 %v251_v32 }
  0x1f   :  { %291 = vmatpush.msra.mxu0 %v699_v0  ;;  %243 = vmatpush.msrb.mxu2 %v705_v2 }
  0x21   :  { %292 = vmatpush.msra.mxu0 %v701_v1  ;;  %244 = vmatpush.msrb.mxu2 %v709_v3 }
  0x23   :  { %293 = vmatpush.msra.mxu0 %v705_v2 }
  0x25   :  { %294 = vmatpush.msra.mxu0 %v709_v3 }
  0x93   :  { %v98_v10 = vpop.f32.mrf.mxu0 }
  0x94   :  { %v101_v11 = vadd.f32 %v98_v10, %v69_v9 }
  0x96   :  { %536 = vtanh.f32 %v101_v11 }
  0x9c   :  { %v537_v12 = vpop.eup %536 }
  0x9d   :  { %513 = vmatmul.msk.f32.vlgmr.msra.gmra.mxu1 %vm77_vm0, %v537_v12  ;;  %515 = vmatmul.msk.f32.vlgmr.msra.gmra.mxu3 %vm77_vm0, %v537_v12 }
  0x9e   :  { %320 = vmatpush.msra.mxu1 %v304_v38  ;;  %370 = vmatpush.msra.mxu3 %v354_v46 }
  0xa0   :  { %321 = vmatpush.msra.mxu1 %v303_v39  ;;  %371 = vmatpush.msra.mxu3 %v353_v47 }
  0xa2   :  { %322 = vmatpush.msra.mxu1 %v302_v40  ;;  %372 = vmatpush.msra.mxu3 %v352_v48 }
  0xa4   :  { %323 = vmatpush.msra.mxu1 %v301_v41  ;;  %373 = vmatpush.msra.mxu3 %v351_v49 }
 0x11a   :  { %v127_v18 = vpop.f32.mrf.mxu1 }
 0x11b   :  { %v130_v19 = vadd.f32 %v127_v18, %v70_v17  ;;  %v535_v18 = vld [vmem:[%s766_s3] ss:$0 sm:$0xff] }
 0x11d   :  { %538 = vtanh.f32 %v130_v19 }
 0x120   :  { %v176_v6 = vpop.f32.mrf.mxu3 }
 0x123   :  { %v539_v20 = vpop.eup %538 }
 0x124   :  { %514 = vmatmul.msk.f32.vlgmr.msra.gmra.mxu2 %vm77_vm0, %v539_v20  ;;  %516 = vmatmul.msk.f32.vlgmr.msrb.gmra.mxu0 %vm77_vm0, %v539_v20 }
 0x125   :  { %341 = vmatpush.msra.mxu2 %v699_v0  ;;  %391 = vmatpush.msrb.mxu0 %v699_v0 }
 0x127   :  { %342 = vmatpush.msra.mxu2 %v701_v1  ;;  %392 = vmatpush.msrb.mxu0 %v701_v1 }
 0x129   :  { %343 = vmatpush.msra.mxu2 %v705_v2  ;;  %393 = vmatpush.msrb.mxu0 %v705_v2 }
 0x12b   :  { %344 = vmatpush.msra.mxu2 %v709_v3  ;;  %394 = vmatpush.msrb.mxu0 %v709_v3 }
 0x1a1   :  { %v196_v26 = vpop.f32.mrf.mxu0 }
 0x1a2   :  { %v199_v27 = vadd.f32 %v196_v26, %v71_v25 }
 0x1a4   :  { %540 = vtanh.f32 %v199_v27 }
 0x1a7   :  { %v745_v33 = vpop.f32.mrf.mxu2 }
 0x1a8   :  { %v177_v10 = vadd.f32 %v176_v6, %v745_v33 }
 0x1aa   :  { %v541_v28 = vpop.eup %540 }
 0x1ab   :  { %517 = vmatmul.msk.f32.vlgmr.msrb.gmra.mxu1 %vm77_vm0, %v541_v28  ;;  %518 = vmatmul.msk.f32.vlgmr.msrb.gmra.mxu2 %vm77_vm0, %v541_v28 }
 0x1ac   :  { %441 = vmatpush.msrb.mxu2 %v699_v0  ;;  %420 = vmatpush.msrb.mxu1 %v404_v54  ;;  %v452_v0 = vld [vmem:[#allocation7 + $0xe8] sm:$0xff] }
 0x1ae   :  { %442 = vmatpush.msrb.mxu2 %v701_v1  ;;  %421 = vmatpush.msrb.mxu1 %v403_v55  ;;  %v451_v1 = vld [vmem:[#allocation7 + $0xe0] sm:$0xff] }
 0x1b0   :  { %443 = vmatpush.msrb.mxu2 %v705_v2  ;;  %422 = vmatpush.msrb.mxu1 %v402_v56  ;;  %v76_v2 = vld [vmem:[#allocation2 + $0x38] sm:$0xff] }
 0x1b2   :  { %444 = vmatpush.msrb.mxu2 %v709_v3  ;;  %423 = vmatpush.msrb.mxu1 %v401_v57 }
 0x228   :  { %v225_v7 = vpop.f32.mrf.mxu1 }
 0x229   :  { %v228_v11 = vadd.f32 %v225_v7, %v177_v10 }
 0x22e   :  { %v246_v35 = vpop.f32.mrf.mxu2 }
 0x22f   :  { %v249_v36 = vadd.f32 %v246_v35, %v72_v34 }
 0x231   :  { %542 = vtanh.f32 %v249_v36 }
 0x237   :  { %v543_v37 = vpop.eup %542 }
 0x238   :  { %519 = vmatmul.msk.f32.vlgmr.msrb.gmra.mxu3 %vm77_vm0, %v543_v37  ;;  %520 = vmatmul.msk.f32.vlgmr.msra.gmra.mxu0 %vm77_vm0, %v543_v37 }
 0x239   :  { %470 = vmatpush.msrb.mxu3 %v454_v62 }
 0x23b   :  { %471 = vmatpush.msrb.mxu3 %v453_v63 }
 0x23d   :  { %472 = vmatpush.msrb.mxu3 %v452_v0 }
 0x23f   :  { %473 = vmatpush.msrb.mxu3 %v451_v1 }
 0x2b5   :  { %v296_v43 = vpop.f32.mrf.mxu0 }
 0x2b6   :  { %v299_v44 = vadd.f32 %v296_v43, %v73_v42 }
 0x2b8   :  { %544 = vtanh.f32 %v299_v44 }
 0x2bb   :  { %v275_v8 = vpop.f32.mrf.mxu3 }
 0x2bc   :  { %v278_v13 = vadd.f32 %v275_v8, %v228_v11 }
 0x2be   :  { %v545_v45 = vpop.eup %544 }
 0x2bf   :  { %521 = vmatmul.msk.f32.vlgmr.msra.gmra.mxu1 %vm77_vm0, %v545_v45  ;;  %522 = vmatmul.msk.f32.vlgmr.msra.gmra.mxu2 %vm77_vm0, %v545_v45 }
 0x33c   :  { %v325_v9 = vpop.f32.mrf.mxu1 }
 0x33d   :  { %v328_v14 = vadd.f32 %v325_v9, %v278_v13 }
 0x342   :  { %v346_v51 = vpop.f32.mrf.mxu2 }
 0x343   :  { %v349_v52 = vadd.f32 %v346_v51, %v74_v50 }
 0x345   :  { %546 = vtanh.f32 %v349_v52 }
 0x34b   :  { %v547_v53 = vpop.eup %546 }
 0x34c   :  { %523 = vmatmul.msk.f32.vlgmr.msra.gmra.mxu3 %vm77_vm0, %v547_v53  ;;  %524 = vmatmul.msk.f32.vlgmr.msrb.gmra.mxu0 %vm77_vm0, %v547_v53 }
 0x3c9   :  { %v396_v59 = vpop.f32.mrf.mxu0 }
 0x3ca   :  { %v399_v60 = vadd.f32 %v396_v59, %v75_v58 }
 0x3cc   :  { %548 = vtanh.f32 %v399_v60 }
 0x3cf   :  { %v375_v12 = vpop.f32.mrf.mxu3 }
 0x3d0   :  { %v378_v16 = vadd.f32 %v375_v12, %v328_v14 }
 0x3d2   :  { %v549_v61 = vpop.eup %548 }
 0x3d3   :  { %525 = vmatmul.msk.f32.vlgmr.msrb.gmra.mxu1 %vm77_vm0, %v549_v61  ;;  %526 = vmatmul.msk.f32.vlgmr.msrb.gmra.mxu2 %vm77_vm0, %v549_v61 }
 0x450   :  { %v425_v15 = vpop.f32.mrf.mxu1 }
 0x451   :  { %v428_v17 = vadd.f32 %v425_v15, %v378_v16 }
 0x456   :  { %v446_v3 = vpop.f32.mrf.mxu2 }
 0x457   :  { %v449_v4 = vadd.f32 %v446_v3, %v76_v2 }
 0x459   :  { %550 = vtanh.f32 %v449_v4 }
 0x45f   :  { %v551_v5 = vpop.eup %550 }
 0x460   :  { %527 = vmatmul.msk.f32.vlgmr.msrb.gmra.mxu3 %vm77_vm0, %v551_v5 }
 0x4e3   :  { %v475_v19 = vpop.f32.mrf.mxu3 }
 0x4e4   :  { %v478_v20 = vadd.f32 %v475_v19, %v428_v17 }
 0x4e6   :  { %v483_v21 = vadd.f32 %v535_v18, %v478_v20 }
 0x4e8   :  { %484 = vmax.xlane.f32.xlu0 %v483_v21 }
 0x55b   :  { %v485_v22 = vpop.xlane.xlu0 %484 }
 0x55c   :  { %v486_v23 = vsub.f32 %v483_v21, %v485_v22 }
 0x55e   :  { %v487_v24 = vmul.f32 1.442695, %v486_v23 }
 0x560   :  { %552 = vpow2.f32 %v487_v24 }
 0x566   :  { %v553_v25 = vpop.eup %552 }
 0x567   :  { %489 = vadd.xlane.f32.xlu0 %v553_v25 }
 0x5da   :  { %v490_v26 = vpop.xlane.xlu0 %489 }
 0x5db   :  { %554 = vlog2.f32 %v490_v26 }
 0x5e1   :  { %v555_v27 = vpop.eup %554 }
 0x5e2   :  { %v492_v28 = vmul.f32 0.6931472, %v555_v27 }
 0x5e4   :  { %v493_v29 = vsub.f32 %v486_v23, %v492_v28 }
 0x5e6   :  { %494 = vst [vmem:[#allocation8] sm:$0xff] %v493_v29 }
 0x5e7   :  { %505 = dma.vmem_to_hbm [thread:$0]  %s501_s6, 128, %s503_s9, [#allocation4]  }
 0x5e8   :  { %656 = dma.done.wait [#allocation4], 128  }
 0x5e9   :  { %657 = vsyncadd [#allocation4], 4294967168 }
 0x5ea   :  { %510 = vsyncpa [#allocation3], 1 }
 0x5eb   :  { %511 = vsyncpa [#allocation6], 1 }
 0x5ec   :  { %512 = vsyncpa [#allocation4], 1 }

</bundles_post_ra>
